<compile_context>
chip_gen: v6e
topology: v6e:2x2x1
jax: 0.10.0
libtpu: 0.0.40
codegen_flags: <defaults>
</compile_context>

<pallas_src>
import jax
import jax.numpy as jnp
import numpy as np
from jax.experimental import pallas as pl
from jax.experimental.pallas import tpu as pltpu

# ------------------------- problem constants (from the module) ---------------
P = {'m1': 2.0, 'm2': 1.0, 'g': 9.81, 'l1': 3.0, 'l2': 5.0}
DATA_SIZE = 8          # args.data_size (small, synthetic)
TIME_HORIZON = 10.0    # args.time_horizon (small, synthetic)
U_MIN, U_MAX = -3.0, 3.0

# Folded Python-float constants (evaluated once, outside the traced math).
_M1, _M2, _G, _L1, _L2 = P['m1'], P['m2'], P['g'], P['l1'], P['l2']
_A1 = (_M1 + _M2) * _L1 * _L1 + _M2 * _L2 * _L2   # M11 constant part = 52.0
_K = _M2 * _L1 * _L2                               # m2*l1*l2 = 15.0
_M22 = _M2 * _L2 * _L2                             # 25.0 (constant M22 / M12 part)
_G1A = (_M1 + _M2) * _G * _L1                      # 88.29
_G2A = _M2 * _G * _L2                              # 49.05


def _round_up(x, m):
    return ((x + m - 1) // m) * m


# ------------------------------- Pallas kernel --------------------------------
def _acrobot_kernel(u_ref, y_ref, o_ref):
    # u_ref : SMEM (1,)            f32  -- control at the precomputed time index
    # y_ref : VMEM (4, block_b)    f32  -- rows: q1, q2, dq1, dq2 (lane-dense batch)
    # o_ref : VMEM (4, block_b)    f32  -- rows: dq1, dq2, ddq1, ddq2
    u = u_ref[0]

    y = y_ref[...]                        # one full-tile load
    q1, q2 = y[0:1, :], y[1:2, :]         # (1, block_b) each, batch on lanes
    dq1, dq2 = y[2:3, :], y[3:4, :]

    s1 = jnp.sin(q1)
    s2 = jnp.sin(q2)
    c2 = jnp.cos(q2)
    s12 = jnp.sin(q1 + q2)

    # Shared subexpressions.
    kc2 = _K * c2                         # m2*l1*l2*cos(q2)
    ks2 = _K * s2                         # m2*l1*l2*sin(q2)

    # Mass matrix (M22 is the constant _M22).
    M11 = _A1 + 2.0 * kc2
    M12 = _M22 + kc2

    # Gravity terms.
    G1 = _G1A * s1 + _G2A * s12
    G2 = _G2A * s12

    # Generalized forces:  tau1 = -C1 - G1,  tau2 = u - C2 - G2.
    tau1 = ks2 * (2.0 * dq1 * dq2 + dq2 * dq2) - G1
    tau2 = u - ks2 * dq1 * dq1 - G2

    # Solve the 2x2 system M @ [ddq1, ddq2] = [tau1, tau2] (det > 0 for these params).
    det = M11 * _M22 - M12 * M12
    inv_det = 1.0 / det                   # exact divide: keeps 1e-5 tolerance tight
    ddq1 = (_M22 * tau1 - M12 * tau2) * inv_det
    ddq2 = (M11 * tau2 - M12 * tau1) * inv_det

    # Lane-dense row stores (no lane-axis concatenate).
    o_ref[0:1, :] = dq1
    o_ref[1:2, :] = dq2
    o_ref[2:3, :] = ddq1
    o_ref[3:4, :] = ddq2


# --------------------------------- wrapper ------------------------------------
def lambda_forward(t, y, u_seq, *, max_block_b=32768):
    """Pallas equivalent of Lambda.forward(t, y).

    t     : Python float (ODE time)
    y     : (B, 4) float32 state batch
    u_seq : (DATA_SIZE,) float32 control sequence
    """
    B = y.shape[0]

    # time_index is a Python int at trace time -> hoist the control lookup.
    time_index = int(t * (DATA_SIZE - 1) / TIME_HORIZON)
    u = u_seq[time_index].reshape(1).astype(jnp.float32)          # (1,) SMEM scalar

    # Lane-dense layout: (4, B) with B padded to a multiple of the block width.
    yT = y.astype(jnp.float32).T                                   # (4, B)
    b_pad128 = _round_up(B, 128)
    block_b = min(max_block_b, b_pad128)                           # multiple of 128
    B_pad = _round_up(B, block_b)
    if B_pad != B:
        yT = jnp.pad(yT, ((0, 0), (0, B_pad - B)))                 # zero pad is safe (det>0)
    grid = (B_pad // block_b,)

    out_t = pl.pallas_call(
        _acrobot_kernel,
        out_shape=jax.ShapeDtypeStruct((4, B_pad), jnp.float32),
        grid=grid,
        in_specs=[
            pl.BlockSpec(memory_space=pltpu.MemorySpace.SMEM),     # u (whole array)
            pl.BlockSpec((4, block_b), lambda i: (0, i)),          # y block, lane-dense
        ],
        out_specs=pl.BlockSpec((4, block_b), lambda i: (0, i)),
        compiler_params=pltpu.CompilerParams(
            dimension_semantics=("parallel",)),
    )(u, yT)

    return out_t[:, :B].T                                          # back to (B, 4)
    # TODO(synk): if called per ODE step inside an integrator, fuse multiple
    # dynamics evaluations (RK stages) into one pallas_call to amortize launch
    # overhead; at tiny B a single call is pure overhead by construction.


# ------------------------------ pure-JAX reference -----------------------------
def _reference(t, y, u_seq):
    m1, m2, g, l1, l2 = P['m1'], P['m2'], P['g'], P['l1'], P['l2']
    ti = int(t * (DATA_SIZE - 1) / TIME_HORIZON)
    u = u_seq[ti]
    q1, q2, dq1, dq2 = y[:, 0], y[:, 1], y[:, 2], y[:, 3]
    s1, s2, c2, s12 = jnp.sin(q1), jnp.sin(q2), jnp.cos(q2), jnp.sin(q1 + q2)
    M11 = (m1 + m2) * l1 * l1 + m2 * l2 * l2 + 2.0 * m2 * l1 * l2 * c2
    M12 = m2 * (l2 * l2 + l1 * l2 * c2)
    M22 = m2 * l2 * l2
    C1 = -m2 * l1 * l2 * s2 * (2.0 * dq1 * dq2 + dq2 * dq2)
    C2 = m2 * l1 * l2 * s2 * dq1 * dq1
    G1 = (m1 + m2) * g * l1 * s1 + m2 * g * l2 * s12
    G2 = m2 * g * l2 * s12
    tau1, tau2 = -C1 - G1, u - C2 - G2
    det = M11 * M22 - M12 * M12
    ddq1 = (M22 * tau1 - M12 * tau2) / det
    ddq2 = (M11 * tau2 - M12 * tau1) / det
    return jnp.stack([dq1, dq2, ddq1, ddq2], axis=1)


if __name__ == "__main__":
    key = jax.random.PRNGKey(0)
    k_u, k_y, k_y2 = jax.random.split(key, 3)

    # u_seq = u_min + (u_max - u_min) * rand(data_size)
    u_seq = U_MIN + (U_MAX - U_MIN) * jax.random.uniform(
        k_u, (DATA_SIZE,), dtype=jnp.float32)

    t = 3.7  # arbitrary query time within [0, TIME_HORIZON]

    # Small batch of acrobot states (B, 4)
    B = 8
    y = jax.random.normal(k_y, (B, 4), dtype=jnp.float32)

    out = jax.block_until_ready(lambda_forward(t, y, u_seq))
    ref = _reference(t, y, u_seq)
    np.testing.assert_allclose(np.asarray(out), np.asarray(ref),
                               rtol=1e-5, atol=1e-5)

    # Exercise the padded / multi-block grid path (still small).
    B2 = 300
    y2 = jax.random.normal(k_y2, (B2, 4), dtype=jnp.float32)
    out2 = jax.block_until_ready(lambda_forward(t, y2, u_seq, max_block_b=128))
    ref2 = _reference(t, y2, u_seq)
    np.testing.assert_allclose(np.asarray(out2), np.asarray(ref2),
                               rtol=1e-5, atol=1e-5)

    print("KERNEL_OK")
</pallas_src>

<mosaic_0001>
module attributes {stable_mosaic.version = 11 : i64} {
  func.func @_acrobot_kernel(%arg0: i32, %arg1: memref<1xf32, #tpu.memory_space<smem>>, %arg2: memref<4x128xf32, #tpu.memory_space<vmem>>, %arg3: memref<4x128xf32, #tpu.memory_space<vmem>>) attributes {dimension_semantics = [#tpu.dimension_semantics<parallel>], iteration_bounds = array<i64: 1>, scalar_prefetch = 0 : i64, scratch_operands = 0 : i64, tpu.core_type = #tpu.core_type<tc>, window_params = [{transform_indices = @transform_0, window_bounds = array<i64: 1>}, {transform_indices = @transform_1, window_bounds = array<i64: 4, 128>}, {transform_indices = @transform_2, window_bounds = array<i64: 4, 128>}]} {
    %c0 = arith.constant 0 : index
    %0 = memref.load %arg1[%c0] : memref<1xf32, #tpu.memory_space<smem>>
    %c0_0 = arith.constant 0 : index
    %c0_1 = arith.constant 0 : index
    %1 = vector.load %arg2[%c0_0, %c0_1] : memref<4x128xf32, #tpu.memory_space<vmem>>, vector<4x128xf32>
    %2 = vector.extract_strided_slice %1 {offsets = [0, 0], sizes = [1, 128], strides = [1, 1]} : vector<4x128xf32> to vector<1x128xf32>
    %3 = vector.extract_strided_slice %1 {offsets = [1, 0], sizes = [1, 128], strides = [1, 1]} : vector<4x128xf32> to vector<1x128xf32>
    %4 = vector.extract_strided_slice %1 {offsets = [2, 0], sizes = [1, 128], strides = [1, 1]} : vector<4x128xf32> to vector<1x128xf32>
    %5 = vector.extract_strided_slice %1 {offsets = [3, 0], sizes = [1, 128], strides = [1, 1]} : vector<4x128xf32> to vector<1x128xf32>
    %6 = math.sin %2 : vector<1x128xf32>
    %7 = math.sin %3 : vector<1x128xf32>
    %8 = math.cos %3 : vector<1x128xf32>
    %9 = arith.addf %2, %3 : vector<1x128xf32>
    %10 = math.sin %9 : vector<1x128xf32>
    %cst = arith.constant 1.500000e+01 : f32
    %11 = vector.broadcast %cst : f32 to vector<1x128xf32>
    %12 = arith.mulf %11, %8 : vector<1x128xf32>
    %cst_2 = arith.constant 1.500000e+01 : f32
    %13 = vector.broadcast %cst_2 : f32 to vector<1x128xf32>
    %14 = arith.mulf %13, %7 : vector<1x128xf32>
    %cst_3 = arith.constant 2.000000e+00 : f32
    %15 = vector.broadcast %cst_3 : f32 to vector<1x128xf32>
    %16 = arith.mulf %15, %12 : vector<1x128xf32>
    %cst_4 = arith.constant 5.200000e+01 : f32
    %17 = vector.broadcast %cst_4 : f32 to vector<1x128xf32>
    %18 = arith.addf %17, %16 : vector<1x128xf32>
    %cst_5 = arith.constant 2.500000e+01 : f32
    %19 = vector.broadcast %cst_5 : f32 to vector<1x128xf32>
    %20 = arith.addf %19, %12 : vector<1x128xf32>
    %cst_6 = arith.constant 8.829000e+01 : f32
    %21 = vector.broadcast %cst_6 : f32 to vector<1x128xf32>
    %22 = arith.mulf %21, %6 : vector<1x128xf32>
    %cst_7 = arith.constant 4.905000e+01 : f32
    %23 = vector.broadcast %cst_7 : f32 to vector<1x128xf32>
    %24 = arith.mulf %23, %10 : vector<1x128xf32>
    %25 = arith.addf %22, %24 : vector<1x128xf32>
    %cst_8 = arith.constant 4.905000e+01 : f32
    %26 = vector.broadcast %cst_8 : f32 to vector<1x128xf32>
    %27 = arith.mulf %26, %10 : vector<1x128xf32>
    %cst_9 = arith.constant 2.000000e+00 : f32
    %28 = vector.broadcast %cst_9 : f32 to vector<1x128xf32>
    %29 = arith.mulf %28, %4 : vector<1x128xf32>
    %30 = arith.mulf %29, %5 : vector<1x128xf32>
    %31 = arith.mulf %5, %5 : vector<1x128xf32>
    %32 = arith.addf %30, %31 : vector<1x128xf32>
    %33 = arith.mulf %14, %32 : vector<1x128xf32>
    %34 = arith.subf %33, %25 : vector<1x128xf32>
    %35 = arith.mulf %14, %4 : vector<1x128xf32>
    %36 = arith.mulf %35, %4 : vector<1x128xf32>
    %37 = vector.broadcast %0 : f32 to vector<1x128xf32>
    %38 = arith.subf %37, %36 : vector<1x128xf32>
    %39 = arith.subf %38, %27 : vector<1x128xf32>
    %cst_10 = arith.constant 2.500000e+01 : f32
    %40 = vector.broadcast %cst_10 : f32 to vector<1x128xf32>
    %41 = arith.mulf %18, %40 : vector<1x128xf32>
    %42 = arith.mulf %20, %20 : vector<1x128xf32>
    %43 = arith.subf %41, %42 : vector<1x128xf32>
    %cst_11 = arith.constant 1.000000e+00 : f32
    %44 = vector.broadcast %cst_11 : f32 to vector<1x128xf32>
    %45 = arith.divf %44, %43 : vector<1x128xf32>
    %cst_12 = arith.constant 2.500000e+01 : f32
    %46 = vector.broadcast %cst_12 : f32 to vector<1x128xf32>
    %47 = arith.mulf %46, %34 : vector<1x128xf32>
    %48 = arith.mulf %20, %39 : vector<1x128xf32>
    %49 = arith.subf %47, %48 : vector<1x128xf32>
    %50 = arith.mulf %49, %45 : vector<1x128xf32>
    %51 = arith.mulf %18, %39 : vector<1x128xf32>
    %52 = arith.mulf %20, %34 : vector<1x128xf32>
    %53 = arith.subf %51, %52 : vector<1x128xf32>
    %54 = arith.mulf %53, %45 : vector<1x128xf32>
    %c0_13 = arith.constant 0 : index
    %c0_14 = arith.constant 0 : index
    %55 = vector.load %arg3[%c0_13, %c0_14] : memref<4x128xf32, #tpu.memory_space<vmem>>, vector<1x128xf32>
    tpu.vector_store %arg3[%c0_13, %c0_14], %4 {strides = array<i32>} : memref<4x128xf32, #tpu.memory_space<vmem>>, vector<1x128xf32>,
    %c1 = arith.constant 1 : index
    %c0_15 = arith.constant 0 : index
    %56 = vector.load %arg3[%c1, %c0_15] : memref<4x128xf32, #tpu.memory_space<vmem>>, vector<1x128xf32>
    tpu.vector_store %arg3[%c1, %c0_15], %5 {strides = array<i32>} : memref<4x128xf32, #tpu.memory_space<vmem>>, vector<1x128xf32>,
    %c2 = arith.constant 2 : index
    %c0_16 = arith.constant 0 : index
    %57 = vector.load %arg3[%c2, %c0_16] : memref<4x128xf32, #tpu.memory_space<vmem>>, vector<1x128xf32>
    tpu.vector_store %arg3[%c2, %c0_16], %50 {strides = array<i32>} : memref<4x128xf32, #tpu.memory_space<vmem>>, vector<1x128xf32>,
    %c3 = arith.constant 3 : index
    %c0_17 = arith.constant 0 : index
    %58 = vector.load %arg3[%c3, %c0_17] : memref<4x128xf32, #tpu.memory_space<vmem>>, vector<1x128xf32>
    tpu.vector_store %arg3[%c3, %c0_17], %54 {strides = array<i32>} : memref<4x128xf32, #tpu.memory_space<vmem>>, vector<1x128xf32>,
    return
  }
  func.func @transform_0(%arg0: i32) -> i32 {
    %c0_i32 = arith.constant 0 : i32
    %c0_i32_0 = arith.constant 0 : i32
    return %c0_i32 : i32
  }
  func.func @transform_1(%arg0: i32) -> (i32, i32) {
    %c0_i32 = arith.constant 0 : i32
    %c0_i32_0 = arith.constant 0 : i32
    return %c0_i32, %arg0 : i32, i32
  }
  func.func @transform_2(%arg0: i32) -> (i32, i32) {
    %c0_i32 = arith.constant 0 : i32
    %c0_i32_0 = arith.constant 0 : i32
    return %c0_i32, %arg0 : i32, i32
  }
}

</mosaic_0001>

<bundles_post_ra>
// kernel: tpu_custom_call.1
= control target key start
LH: loop header
LB: loop body
LE: loop exit
PB: predicated region body
PF: predicated region fallthrough
CT: control target
= control target key end

     0   :  { %8 = vsyncpa [#allocation4], 0  ;;  %s599_s0 = inlined_call_operand.<no memory space> [shape: f32[1], index: 0, kind: input, shape index: {}]   ;;  %s600_s1 = inlined_call_operand.hbm [shape: f32[4,128], index: 1, kind: input, shape index: {}]   ;;  %s601_s2 = inlined_call_operand.hbm [shape: f32[4,128], index: 2, kind: output, shape index: {}]  }
   0x1   :  { %9 = vsyncpa [#allocation5], 0  ;;  %s487_s9 = smov [#allocation3]  }
   0x2   :  { %s18_s10 = sshll.u32 %s487_s9, 4  ;;  %s19_s10 = int_to_ptr.vmem [resolvable:$true] %s18_s10 }
   0x3   :  { %s451_s11 = scalar_lea.vmem %s19_s10, 64  ;;  %p456_p1 = scmp.lt.s32.totalorder %s19_s10, %s19_s10 }
   0x4   :  { %p452_p0 = scmp.ne.s32.totalorder %s19_s10, %s451_s11  ;;  %p457_p2 = scmp.lt.s32.totalorder %s451_s11, %s451_s11 }
   0x6   :  { %p458_p3 = por %p457_p2, %p456_p1 }
   0x8   :  { %p459_p4 = pnand %p458_p3, %p452_p0 }
   0xa   :  { %462 = shalt.err (!%p459_p4)
}
   0xb   :  { %21 = dma.hbm_to_vmem [thread:$0]  %s600_s1, 64, %s19_s10, [#allocation4]  }
   0xc   :  { %483 = dma.done.wait [#allocation4], 64  }
   0xd   :  { %484 = vsyncadd [#allocation4], 4294967232  ;;  %v513_v0 = vld [vmem:[#allocation3] sm:$0xf]  ;;  %v488_v21 = vmov 683565275  }
   0xe   :  { %386 = vst [vmem:[#allocation6 - $0x2] sm:$0x4] %v513_v0  ;;  %387 = vst [vmem:[#allocation6 - $0x2] sm:$0x8] %v513_v0  ;;  %v27_v1 = vand.u32 2147483647, %v513_v0 }
   0xf   :  { %v30_v2 = vand.u32 2139095040, %v513_v0  ;;  %v520_v3 = vrot.slane %v513_v0, 1  ;;  %v489_v23 = vmov 2475754826   ;;  %v490_v25 = vmov 2131351028  }
  0x10   :  { %v34_v5 = vand.u32 8388607, %v27_v1  ;;  %v491_v27 = vmov 2102212464   ;;  %v492_v29 = vmov 920167782  }
  0x11   :  { %v31_v4 = vshrl.u32 %v30_v2, 23  ;;  %v526_v6 = vadd.f32 %v520_v3, %v513_v0  ;;  %v493_v37 = vmov 1326507024   ;;  %vm29_vm14 = vcmp.lt.s32.totalorder %v513_v0, 0 }
  0x12   :  { %v35_v11 = vor.u32 8388608, %v34_v5  ;;  %vm28_vm15 = vcmp.le.f32.partialorder %v27_v1, 0.7853982 }
  0x13   :  { %v405_v7 = vadd.s32 4294967169, %v31_v4  ;;  %v238_v8 = vand.u32 2147483647, %v526_v6  ;;  %v241_v9 = vand.u32 2139095040, %v526_v6 }
  0x14   :  { %v532_v18 = vshll.u32 %v35_v11, 8 }
  0x15   :  { %v37_v10 = vadd.s32 1, %v405_v7  ;;  %v242_v12 = vshrl.u32 %v241_v9, 23  ;;  %v245_v15 = vand.u32 8388607, %v238_v8 }
  0x17   :  { %vm38_vm0 = vcmp.gt.s32.totalorder %v37_v10, 0  ;;  %v413_v14 = vadd.s32 4294967169, %v242_v12  ;;  %v246_v31 = vor.u32 8388608, %v245_v15 }
  0x18   :  { %v39_v13 = vsel %vm38_vm0, %v37_v10, 0  ;;  %vm240_vm0 = vcmp.lt.s32.totalorder %v526_v6, 0 }
  0x19   :  { %v40_v16 = vshrl.u32 %v39_v13, 5  ;;  %v41_v17 = vand.u32 31, %v39_v13  ;;  %v248_v19 = vadd.s32 1, %v413_v14  ;;  %v286_v59 = vshll.u32 %v246_v31, 8 }
  0x1b   :  { %v42_v20 = vsub.s32 32, %v41_v17  ;;  %v44_v22 = vshll.u32 %v488_v21, %v41_v17  ;;  %v47_v24 = vshll.u32 %v489_v23, %v41_v17  ;;  %v50_v26 = vshll.u32 %v490_v25, %v41_v17 }
  0x1c   :  { %v53_v28 = vshll.u32 %v491_v27, %v41_v17  ;;  %v56_v30 = vshll.u32 %v492_v29, %v41_v17  ;;  %vm59_vm1 = vcmp.lt.s32.totalorder %v40_v16, 1  ;;  %vm60_vm2 = vcmp.lt.s32.totalorder %v40_v16, 2 }
  0x1d   :  { %v43_v32 = vshrl.u32 %v488_v21, %v42_v20  ;;  %v45_v33 = vshrl.u32 %v489_v23, %v42_v20  ;;  %v48_v34 = vshrl.u32 %v490_v25, %v42_v20  ;;  %v51_v35 = vshrl.u32 %v491_v27, %v42_v20 }
  0x1e   :  { %v54_v36 = vshrl.u32 %v492_v29, %v42_v20  ;;  %v57_v38 = vshrl.u32 %v493_v37, %v42_v20  ;;  %vm62_vm3 = vcmp.lt.s32.totalorder %v40_v16, 4  ;;  %vm249_vm4 = vcmp.gt.s32.totalorder %v248_v19, 0 }
  0x1f   :  { %v46_v39 = vor.u32 %v45_v33, %v44_v22  ;;  %v49_v40 = vor.u32 %v48_v34, %v47_v24  ;;  %v52_v41 = vor.u32 %v51_v35, %v50_v26  ;;  %vm61_vm5 = vcmp.lt.s32.totalorder %v40_v16, 3 }
  0x20   :  { %v55_v42 = vor.u32 %v54_v36, %v53_v28  ;;  %v58_v43 = vor.u32 %v57_v38, %v56_v30  ;;  %v250_v44 = vsel %vm249_vm4, %v248_v19, 0 }
  0x21   :  { %v63_v45 = vsel %vm59_vm1, %v43_v32, %v46_v39  ;;  %v64_v46 = vsel %vm62_vm3, %v52_v41, 2102212464  ;;  %v67_v47 = vsel %vm59_vm1, %v46_v39, %v49_v40  ;;  %v71_v48 = vsel %vm59_vm1, %v49_v40, %v52_v41 }
  0x22   :  { %v65_v49 = vsel %vm61_vm5, %v49_v40, %v64_v46  ;;  %v68_v50 = vsel %vm62_vm3, %v55_v42, 920167782  ;;  %v72_v51 = vsel %vm62_vm3, %v58_v43, 1326507024  ;;  %v251_v54 = vshrl.u32 %v250_v44, 5 }
  0x23   :  { %v69_v52 = vsel %vm61_vm5, %v52_v41, %v68_v50  ;;  %v73_v53 = vsel %vm61_vm5, %v55_v42, %v72_v51  ;;  %v252_v55 = vand.u32 31, %v250_v44  ;;  %v66_v56 = vsel %vm60_vm2, %v63_v45, %v65_v49 }
  0x24   :  { %v70_v57 = vsel %vm60_vm2, %v67_v47, %v69_v52  ;;  %v74_v58 = vsel %vm60_vm2, %v71_v48, %v73_v53  ;;  %v82_v9 = vmul.u32 %v532_v18, %v66_v56  ;;  %vm270_vm6 = vcmp.lt.s32.totalorder %v251_v54, 1 }
  0x25   :  { %v541_v60 = vmul.u32.u64.low %v532_v18, %v74_v58  ;;  %v542_v61 = vmul.u32.u64.high %v532_v18, %v74_v58, %v541_v60  ;;  %v545_v62 = vmul.u32.u64.low %v532_v18, %v70_v57  ;;  %v546_v63 = vmul.u32.u64.high %v532_v18, %v70_v57, %v545_v62 }
  0x26   :  { %v253_v2 = vsub.s32 32, %v252_v55  ;;  %v255_v4 = vshll.u32 %v488_v21, %v252_v55  ;;  %v258_v5 = vshll.u32 %v489_v23, %v252_v55  ;;  %v261_v7 = vshll.u32 %v490_v25, %v252_v55 }
  0x27   :  { %v264_v10 = vshll.u32 %v491_v27, %v252_v55  ;;  %v267_v11 = vshll.u32 %v492_v29, %v252_v55  ;;  %vm84_vm7 = vc.u32 %v542_v61, %v545_v62  ;;  %v85_v16 = vadd.s32 1, %v546_v63 }
  0x28   :  { %v254_v12 = vshrl.u32 %v488_v21, %v253_v2  ;;  %v256_v13 = vshrl.u32 %v489_v23, %v253_v2  ;;  %v259_v14 = vshrl.u32 %v490_v25, %v253_v2  ;;  %v262_v15 = vshrl.u32 %v491_v27, %v253_v2 }
  0x29   :  { %v265_v17 = vshrl.u32 %v492_v29, %v253_v2  ;;  %vm271_vm8 = vcmp.lt.s32.totalorder %v251_v54, 2  ;;  %v268_v24 = vshrl.u32 %v493_v37, %v253_v2  ;;  %v86_v26 = vsel %vm84_vm7, %v85_v16, %v546_v63 }
  0x2a   :  { %v257_v19 = vor.u32 %v256_v13, %v255_v4  ;;  %v260_v20 = vor.u32 %v259_v14, %v258_v5  ;;  %v263_v22 = vor.u32 %v262_v15, %v261_v7  ;;  %vm272_vm9 = vcmp.lt.s32.totalorder %v251_v54, 3 }
  0x2b   :  { %v266_v18 = vor.u32 %v265_v17, %v264_v10  ;;  %vm273_vm10 = vcmp.lt.s32.totalorder %v251_v54, 4  ;;  %v87_v28 = vadd.s32 %v86_v26, %v82_v9  ;;  %v269_v21 = vor.u32 %v268_v24, %v267_v11 }
  0x2c   :  { %v274_v23 = vsel %vm270_vm6, %v254_v12, %v257_v19  ;;  %v275_v25 = vsel %vm273_vm10, %v263_v22, 2102212464  ;;  %v278_v30 = vsel %vm270_vm6, %v257_v19, %v260_v20  ;;  %v282_v29 = vsel %vm270_vm6, %v260_v20, %v263_v22 }
  0x2d   :  { %v276_v27 = vsel %vm272_vm9, %v260_v20, %v275_v25  ;;  %v279_v31 = vsel %vm273_vm10, %v266_v18, 920167782  ;;  %v88_v32 = vadd.s32 536870912, %v87_v28  ;;  %v283_v34 = vsel %vm273_vm10, %v269_v21, 1326507024 }
  0x2e   :  { %v280_v33 = vsel %vm272_vm9, %v263_v22, %v279_v31  ;;  %v277_v35 = vsel %vm271_vm8, %v274_v23, %v276_v27  ;;  %v284_v37 = vsel %vm272_vm9, %v266_v18, %v283_v34  ;;  %v83_v57 = vadd.s32 %v545_v62, %v542_v61 }
  0x2f   :  { %v281_v36 = vsel %vm271_vm8, %v278_v30, %v280_v33  ;;  %v89_v38 = vshrl.u32 %v88_v32, 30  ;;  %v285_v39 = vsel %vm271_vm8, %v282_v29, %v284_v37  ;;  %v293_v45 = vmul.u32 %v286_v59, %v277_v35 }
  0x30   :  { %v558_v40 = vmul.u32.u64.low %v286_v59, %v281_v36  ;;  %v559_v41 = vmul.u32.u64.high %v286_v59, %v281_v36, %v558_v40  ;;  %v561_v42 = vmul.u32.u64.low %v286_v59, %v285_v39  ;;  %v562_v43 = vmul.u32.u64.high %v286_v59, %v285_v39, %v561_v42 }
  0x31   :  { %v90_v44 = vshll.u32 %v89_v38, 30  ;;  %v113_v26 = vsub.s32 4, %v89_v38  ;;  %vm576_vm1 = vcmp.le.f32.partialorder %v238_v8, 0.7853982  ;;  %vm119_vm8 = vweird.f32 %v513_v0 }
  0x32   :  { %v296_v47 = vadd.s32 1, %v559_v41  ;;  %vm295_vm11 = vc.u32 %v562_v43, %v558_v40  ;;  %v294_v17 = vadd.s32 %v558_v40, %v562_v43 }
  0x33   :  { %v91_v46 = vsub.s32 %v87_v28, %v90_v44  ;;  %v114_v30 = vsel %vm29_vm14, %v113_v26, %v89_v38 }
  0x34   :  { %v297_v49 = vsel %vm295_vm11, %v296_v47, %v559_v41  ;;  %v116_v33 = vsel %vm28_vm15, 0, %v114_v30 }
  0x35   :  { %v93_v48 = vsub.s32 0, %v91_v46  ;;  %v298_v50 = vadd.s32 %v297_v49, %v293_v45  ;;  %v120_v34 = vadd.s32 3, %v116_v33  ;;  %v224_v40 = vand.u32 3, %v116_v33 }
  0x37   :  { %v406_v51 = vmin.u32 %v93_v48, %v91_v46  ;;  %v299_v52 = vadd.s32 536870912, %v298_v50  ;;  %v121_v39 = vand.u32 3, %v120_v34  ;;  %vm229_vm3 = vcmp.eq.s32.totalorder %v224_v40, 2 }
  0x38   :  { %vm226_vm5 = vcmp.eq.s32.totalorder %v224_v40, 0  ;;  %vm225_vm7 = vcmp.lt.s32.totalorder %v224_v40, 2 }
  0x39   :  { %v95_v53 = vclz %v406_v51  ;;  %v300_v54 = vshrl.u32 %v299_v52, 30  ;;  %vm126_vm2 = vcmp.eq.s32.totalorder %v121_v39, 2  ;;  %vm123_vm4 = vcmp.eq.s32.totalorder %v121_v39, 0 }
  0x3a   :  { %vm122_vm6 = vcmp.lt.s32.totalorder %v121_v39, 2  ;;  %v350_v52 = vmul.f32 2.0, %v513_v0 }
  0x3b   :  { %v407_v55 = vadd.s32 4294967294, %v95_v53  ;;  %v301_v56 = vshll.u32 %v300_v54, 30  ;;  %v324_v1 = vsub.s32 4, %v300_v54  ;;  %v352_v53 = vmul.f32 %v513_v0, %v513_v0 }
  0x3d   :  { %vm408_vm12 = vcmp.lt.s32.totalorder %v407_v55, 0  ;;  %v302_v59 = vsub.s32 %v298_v50, %v301_v56  ;;  %v325_v41 = vsel %vm240_vm0, %v324_v1, %v300_v54 }
  0x3e   :  { %v98_v58 = vsel %vm408_vm12, 0, %v407_v55  ;;  %v327_v8 = vsel %vm576_vm1, 0, %v325_v41  ;;  %vm330_vm12 = vweird.f32 %v526_v6 }
  0x3f   :  { %v99_v60 = vsub.s32 32, %v98_v58  ;;  %v100_v63 = vshll.u32 %v91_v46, %v98_v58  ;;  %v103_v2 = vsub.s32 4294967266, %v98_v58  ;;  %v304_v4 = vsub.s32 0, %v302_v59 }
  0x40   :  { %v331_v49 = vadd.s32 3, %v327_v8 }
  0x41   :  { %v101_v5 = vshrl.u32 %v83_v57, %v99_v60  ;;  %v104_v7 = vadd.s32 127, %v103_v2  ;;  %v414_v9 = vmin.u32 %v304_v4, %v302_v59  ;;  %v354_v2 = vrot.slane %v352_v53, 1 }
  0x42   :  { %v332_v58 = vand.u32 3, %v331_v49 }
  0x43   :  { %v102_v10 = vor.u32 %v101_v5, %v100_v63  ;;  %v105_v11 = vshll.u32 %v104_v7, 23  ;;  %v306_v12 = vclz %v414_v9  ;;  %v351_v63 = vmul.f32 %v350_v52, %v520_v3 }
  0x44   :  { %vm337_vm9 = vcmp.eq.s32.totalorder %v332_v58, 2  ;;  %vm334_vm10 = vcmp.eq.s32.totalorder %v332_v58, 0  ;;  %vm333_vm11 = vcmp.lt.s32.totalorder %v332_v58, 2 }
  0x45   :  { %v106_v13 = vor.u32 4788187, %v105_v11  ;;  %v109_v14 = vcvt.s32.f32 %v102_v10  ;;  %v415_v15 = vadd.s32 4294967294, %v306_v12 }
  0x47   :  { %v107_v16 = vand.u32 2147483647, %v106_v13  ;;  %vm416_vm13 = vcmp.lt.s32.totalorder %v415_v15, 0  ;;  %v356_v13 = vadd.f32 %v354_v2, %v351_v63 }
  0x48   :  { %v309_v62 = vsel %vm416_vm13, 0, %v415_v15 }
  0x49   :  { %v110_v61 = vmul.f32 %v109_v14, %v107_v16  ;;  %v310_v19 = vsub.s32 32, %v309_v62  ;;  %v311_v20 = vshll.u32 %v302_v59, %v309_v62  ;;  %v314_v22 = vsub.s32 4294967266, %v309_v62 }
  0x4a   :  { %v367_v62 = vstv %s599_s0  ;;  %s494_s0 = smov [#allocation6]  }
  0x4b   :  { %v111_v24 = vxor.u32 2147483648, %v110_v61  ;;  %v312_v18 = vshrl.u32 %v294_v17, %v310_v19  ;;  %v315_v28 = vadd.s32 127, %v314_v22  ;;  %s396_s15 = sshll.u32 %s494_s0, 4  ;;  %s397_s15 = int_to_ptr.vmem [resolvable:$true] %s396_s15 }
  0x4c   :  { %s463_s16 = scalar_lea.vmem %s397_s15, 64  ;;  %p468_p6 = scmp.lt.s32.totalorder %s397_s15, %s397_s15 }
  0x4d   :  { %v112_v21 = vsel %vm29_vm14, %v111_v24, %v110_v61  ;;  %v313_v25 = vor.u32 %v312_v18, %v311_v20  ;;  %v316_v27 = vshll.u32 %v315_v28, 23  ;;  %v358_v24 = vrot.slane %v356_v13, 1  ;;  %p464_p5 = scmp.ne.s32.totalorder %s397_s15, %s463_s16  ;;  %p469_p7 = scmp.lt.s32.totalorder %s463_s16, %s463_s16 }
  0x4e   :  { %v115_v23 = vsel %vm28_vm15, %v513_v0, %v112_v21 }
  0x4f   :  { %433 = vcosq.f32 %v115_v23  ;;  %v317_v31 = vor.u32 4788187, %v316_v27  ;;  %v320_v29 = vcvt.s32.f32 %v313_v25  ;;  %p470_p8 = por %p469_p7, %p468_p6 }
  0x50   :  { %435 = vsinq.f32 %v115_v23 }
  0x51   :  { %v318_v32 = vand.u32 2147483647, %v317_v31  ;;  %p471_p9 = pnand %p470_p8, %p464_p5 }
  0x53   :  { %v321_v35 = vmul.f32 %v320_v29, %v318_v32 }
  0x55   :  { %v322_v37 = vxor.u32 2147483648, %v321_v35 }
  0x57   :  { %v323_v38 = vsel %vm240_vm0, %v322_v37, %v321_v35 }
  0x58   :  { %v326_v42 = vsel %vm576_vm1, %v526_v6, %v323_v38 }
  0x59   :  { %437 = vcosq.f32 %v326_v42 }
  0x5a   :  { %439 = vsinq.f32 %v326_v42 }
  0x5c   :  { %v434_v43 = vpop.eup %433 }
  0x5d   :  { %v436_v44 = vpop.eup %435  ;;  %v127_v45 = vxor.u32 2147483648, %v434_v43 }
  0x5e   :  { %v124_v46 = vxor.u32 2147483648, %v436_v44 }
  0x5f   :  { %v128_v47 = vsel %vm126_vm2, %v127_v45, %v436_v44  ;;  %v231_v48 = vsel %vm229_vm3, %v127_v45, %v436_v44 }
  0x60   :  { %v125_v50 = vsel %vm123_vm4, %v434_v43, %v124_v46  ;;  %v228_v51 = vsel %vm226_vm5, %v434_v43, %v124_v46 }
  0x61   :  { %v129_v54 = vsel %vm122_vm6, %v125_v50, %v128_v47  ;;  %v232_v55 = vsel %vm225_vm7, %v228_v51, %v231_v48 }
  0x62   :  { %v130_v56 = vsel %vm119_vm8, nan, %v129_v54  ;;  %v233_v57 = vsel %vm119_vm8, nan, %v232_v55 }
  0x63   :  { %v342_v59 = vmul.f32 15.0, %v233_v57  ;;  %v343_v60 = vmul.f32 15.0, %v130_v56  ;;  %v347_v22 = vmul.f32 88.29, %v130_v56 }
  0x65   :  { %v344_v4 = vmul.f32 2.0, %v342_v59  ;;  %v346_v5 = vadd.f32 25.0, %v342_v59  ;;  %v365_v7 = vmul.f32 %v343_v60, %v520_v3  ;;  %v360_v23 = vmul.f32 %v358_v24, %v343_v60 }
  0x66   :  { %v438_v9 = vpop.eup %437 }
  0x67   :  { %v345_v10 = vadd.f32 52.0, %v344_v4  ;;  %v374_v11 = vmul.f32 %v346_v5, %v346_v5  ;;  %v440_v12 = vpop.eup %439  ;;  %v338_v0 = vxor.u32 2147483648, %v438_v9  ;;  %v366_v17 = vmul.f32 %v365_v7, %v520_v3 }
  0x68   :  { %v335_v14 = vxor.u32 2147483648, %v440_v12 }
  0x69   :  { %v373_v15 = vmul.f32 25.0, %v345_v10  ;;  %v339_v16 = vsel %vm337_vm9, %v338_v0, %v440_v12  ;;  %v368_v28 = vsub.f32 %v367_v62, %v366_v17 }
  0x6a   :  { %v336_v61 = vsel %vm334_vm10, %v438_v9, %v335_v14 }
  0x6b   :  { %v375_v19 = vsub.f32 %v373_v15, %v374_v11  ;;  %v340_v20 = vsel %vm333_vm11, %v336_v61, %v339_v16 }
  0x6c   :  { %v341_v26 = vsel %vm330_vm12, nan, %v340_v20 }
  0x6d   :  { %441 = vrcp.f32 %v375_v19  ;;  %v348_v18 = vmul.f32 49.05, %v341_v26 }
  0x6f   :  { %v349_v21 = vadd.f32 %v348_v18, %v347_v22  ;;  %v370_v25 = vrot.slane %v348_v18, 7 }
  0x71   :  { %v362_v6 = vrot.slane %v349_v21, 7  ;;  %v372_v27 = vsub.f32 %v368_v28, %v370_v25 }
  0x73   :  { %v364_v30 = vsub.f32 %v360_v23, %v362_v6  ;;  %v379_v3 = vmul.f32 %v372_v27, %v346_v5  ;;  %v382_v31 = vmul.f32 %v372_v27, %v345_v10 }
  0x75   :  { %v378_v29 = vmul.f32 25.0, %v364_v30  ;;  %v383_v32 = vmul.f32 %v364_v30, %v346_v5 }
  0x77   :  { %v380_v33 = vsub.f32 %v378_v29, %v379_v3  ;;  %v384_v34 = vsub.f32 %v382_v31, %v383_v32 }
  0x7a   :  { %v442_v35 = vpop.eup %441 }
  0x7b   :  { %v381_v1 = vmul.f32 %v442_v35, %v380_v33  ;;  %v385_v36 = vmul.f32 %v442_v35, %v384_v34 }
  0x7d   :  { %388 = vst [vmem:[#allocation6 + $0x1] sm:$0x2] %v381_v1  ;;  %389 = vst [vmem:[#allocation6 + $0x2] sm:$0x2] %v385_v36 }
  0x7e   :  { %474 = shalt.err (!%p471_p9)
}
  0x7f   :  { %399 = dma.vmem_to_hbm [thread:$0]  %s397_s15, 64, %s601_s2, [#allocation5]  }
  0x80   :  { %485 = dma.done.wait [#allocation5], 64  }
  0x81   :  { %486 = vsyncadd [#allocation5], 4294967232 }
  0x82   :  { %403 = vsyncpa [#allocation4], 1 }
  0x83   :  { %404 = vsyncpa [#allocation5], 1 }

</bundles_post_ra>
